<compile_context>
chip_gen: v7x
topology: tpu7x:2x2x1
jax: 0.10.0
libtpu: 0.0.40
codegen_flags: <defaults>
</compile_context>

<pallas_src>
import jax
import jax.numpy as jnp
from jax import lax
from jax.experimental import pallas as pl
from jax.experimental.pallas import tpu as pltpu


def _default_elementwise_dtype():
    """bf16 elementwise on bf16-native VALUs (v6e / v7x), f32 elsewhere (v5e...)."""
    try:
        kind = jax.devices()[0].device_kind.lower()
    except Exception:
        return jnp.float32
    if any(tag in kind for tag in ("v6", "v7", "7x")):
        return jnp.bfloat16
    return jnp.float32


def _make_mlp_kernel(chunk, n_chunks, compute_dtype):
    def mlp_kernel(xT_ref, w1c0_ref, w1c1_ref, b1_ref, w2_ref, b2_ref, oT_ref):
        # Weight tiles use constant index_maps -> VMEM-resident across grid
        # steps; load (and optionally downcast) them once per step, outside the
        # chunk loop, so no per-chunk re-broadcast of slices is emitted.
        w1c0 = w1c0_ref[...].astype(compute_dtype)   # (64, 1) fc1 column 0
        w1c1 = w1c1_ref[...].astype(compute_dtype)   # (64, 1) fc1 column 1
        b1 = b1_ref[...].astype(compute_dtype)       # (64, 1)
        w2 = w2_ref[...].astype(compute_dtype)       # (64, 1) fc2 as a column
        b2 = b2_ref[0, 0]                            # f32 scalar from SMEM

        def body(c, carry):
            start = pl.multiple_of(c * chunk, 128)
            xc = xT_ref[:, pl.ds(start, chunk)].astype(compute_dtype)   # (2, chunk)
            # fc1 (K=2) as two VPU broadcast FMAs -- the MXU would be wasted here.
            h = w1c0 * xc[0:1, :] + w1c1 * xc[1:2, :] + b1              # (64, chunk)
            h = jnp.maximum(h, 0.0)                                     # ReLU
            # fc2 (N=1): elementwise multiply, then f32 sublane reduction + bias.
            prod = (w2 * h).astype(jnp.float32)
            o = jnp.sum(prod, axis=0, keepdims=True) + b2               # (1, chunk) f32
            oT_ref[:, pl.ds(start, chunk)] = o.astype(oT_ref.dtype)     # lane-dense
            return carry

        # Short fixed trip count: fully unroll for LLO scheduler visibility.
        lax.fori_loop(0, n_chunks, body, 0, unroll=True)

    return mlp_kernel


def simple_nn_forward(x, w1, b1, w2, b2, *, tile_b=4096, inner_chunk=None,
                      elementwise_dtype=None):
    """Forward pass of SimpleNN.

    x: (B, 2); w1: (64, 2); b1: (64,); w2: (1, 64); b2: (1,)  ->  (B, 1) f32.
    (PyTorch nn.Linear weight layout: (out_features, in_features).)
    """
    B = x.shape[0]
    hidden = w1.shape[0]

    cdt = elementwise_dtype
    if cdt is None:
        cdt = _default_elementwise_dtype()
    cdt = jnp.dtype(cdt)

    def ceil_to(n, m):
        return ((n + m - 1) // m) * m

    # --- batch tiling (lane axis) -------------------------------------------
    b128 = max(ceil_to(B, 128), 128)            # batch padded to a lane multiple
    tb = min(ceil_to(tile_b, 128), b128)        # tile size, multiple of 128
    # v7x has 2 TensorCores; the "parallel" grid axis is how work is sharded
    # across them.  If the whole batch landed in one tile, split it in two.
    if b128 > 128 and pl.cdiv(b128, tb) < 2:
        tb = ceil_to((b128 + 1) // 2, 128)
    padded_B = pl.cdiv(b128, tb) * tb
    n_tiles = padded_B // tb

    # --- inner chunking (keeps (64, chunk) hidden state in vregs) ------------
    if inner_chunk is None:
        inner_chunk = 512 if cdt == jnp.bfloat16 else 256
    chunk = min(ceil_to(inner_chunk, 128), tb)
    if tb % chunk != 0:
        chunk = 128                             # tb is a multiple of 128
    n_chunks = tb // chunk

    # --- wrapper-side layout plumbing (one pad, tiny slices) -----------------
    xT = jnp.pad(x.astype(jnp.float32).T, ((0, 0), (0, padded_B - B)))  # (2, padded_B)
    w1c0 = w1[:, 0:1].astype(jnp.float32)       # (64, 1)
    w1c1 = w1[:, 1:2].astype(jnp.float32)       # (64, 1)
    b1c = b1.reshape(hidden, 1).astype(jnp.float32)
    w2c = w2.reshape(hidden, 1).astype(jnp.float32)
    b2s = b2.reshape(1, 1).astype(jnp.float32)  # SMEM scalar

    kernel = _make_mlp_kernel(chunk, n_chunks, cdt)

    outT = pl.pallas_call(
        kernel,
        out_shape=jax.ShapeDtypeStruct((1, padded_B), jnp.float32),
        grid=(n_tiles,),
        in_specs=[
            pl.BlockSpec((2, tb), lambda i: (0, i)),            # x tile (pipelined)
            pl.BlockSpec((hidden, 1), lambda i: (0, 0)),        # w1 col 0 (resident)
            pl.BlockSpec((hidden, 1), lambda i: (0, 0)),        # w1 col 1 (resident)
            pl.BlockSpec((hidden, 1), lambda i: (0, 0)),        # b1       (resident)
            pl.BlockSpec((hidden, 1), lambda i: (0, 0)),        # w2       (resident)
            pl.BlockSpec(memory_space=pltpu.MemorySpace.SMEM),  # b2 scalar
        ],
        out_specs=pl.BlockSpec((1, tb), lambda i: (0, i)),      # lane-dense store
        compiler_params=pltpu.CompilerParams(
            dimension_semantics=("parallel",),
        ),
    )(xT, w1c0, w1c1, b1c, w2c, b2s)

    # Padded batch lanes hold relu(b1)@w2 + b2 garbage; slice them off here and
    # never consume them elsewhere.
    return outT[:, :B].T                                         # (B, 1)


def init_params(key):
    # Deterministic init mimicking nn.Linear defaults: U(-1/sqrt(fan_in), +).
    k1, k2, k3, k4 = jax.random.split(key, 4)
    in1, h, out = 2, 64, 1
    bound1 = 1.0 / jnp.sqrt(in1)
    bound2 = 1.0 / jnp.sqrt(h)
    # PyTorch-native shapes: weight (out_features, in_features), bias (out_features,)
    w1 = jax.random.uniform(k1, (h, in1), jnp.float32, -bound1, bound1)
    b1 = jax.random.uniform(k2, (h,), jnp.float32, -bound1, bound1)
    w2 = jax.random.uniform(k3, (out, h), jnp.float32, -bound2, bound2)
    b2 = jax.random.uniform(k4, (out,), jnp.float32, -bound2, bound2)
    return w1, b1, w2, b2


if __name__ == "__main__":
    key = jax.random.PRNGKey(0)
    kx, kp = jax.random.split(key)

    w1, b1, w2, b2 = init_params(kp)

    def ref_forward(x):
        # Plain-JAX reference, same math as the PyTorch forward.
        return jnp.maximum(x @ w1.T + b1, 0.0) @ w2.T + b2

    # 1) Small batch, strict tolerance, pure-f32 kernel math (exact on any TPU).
    batch = 8
    x = jax.random.normal(kx, (batch, 2), jnp.float32)
    out = jax.block_until_ready(
        simple_nn_forward(x, w1, b1, w2, b2, elementwise_dtype=jnp.float32))
    assert out.shape == (batch, 1), out.shape
    assert jnp.allclose(out, ref_forward(x), atol=1e-5, rtol=1e-5)

    # 2) Multi-tile / multi-chunk path (padding, grid > 1, inner loop), still f32.
    batch2 = 1000
    x2 = jax.random.normal(kx, (batch2, 2), jnp.float32)
    out2 = jax.block_until_ready(
        simple_nn_forward(x2, w1, b1, w2, b2, elementwise_dtype=jnp.float32))
    assert out2.shape == (batch2, 1), out2.shape
    assert jnp.allclose(out2, ref_forward(x2), atol=1e-5, rtol=1e-5)

    # 3) Default path: bf16 elementwise on v6e/v7x (f32 accumulate), f32 elsewhere.
    auto_dt = _default_elementwise_dtype()
    out3 = jax.block_until_ready(simple_nn_forward(x, w1, b1, w2, b2))
    tol = 3e-2 if jnp.dtype(auto_dt) == jnp.bfloat16 else 1e-5
    assert out3.shape == (batch, 1), out3.shape
    assert jnp.allclose(out3, ref_forward(x), atol=tol, rtol=tol)

    print("KERNEL_OK")
</pallas_src>

<mosaic_0001>
module attributes {stable_mosaic.version = 11 : i64} {
  func.func @mlp_kernel(%arg0: i32, %arg1: memref<2x128xf32, #tpu.memory_space<vmem>>, %arg2: memref<64x1xf32, #tpu.memory_space<vmem>>, %arg3: memref<64x1xf32, #tpu.memory_space<vmem>>, %arg4: memref<64x1xf32, #tpu.memory_space<vmem>>, %arg5: memref<64x1xf32, #tpu.memory_space<vmem>>, %arg6: memref<1x1xf32, #tpu.memory_space<smem>>, %arg7: memref<1x128xf32, #tpu.memory_space<vmem>>) attributes {dimension_semantics = [#tpu.dimension_semantics<parallel>], iteration_bounds = array<i64: 1>, scalar_prefetch = 0 : i64, scratch_operands = 0 : i64, tpu.core_type = #tpu.core_type<tc>, window_params = [{transform_indices = @transform_0, window_bounds = array<i64: 2, 128>}, {pipeline_mode = #tpu.pipeline_mode<synchronous>, transform_indices = @transform_1, window_bounds = array<i64: 64, 1>}, {pipeline_mode = #tpu.pipeline_mode<synchronous>, transform_indices = @transform_2, window_bounds = array<i64: 64, 1>}, {pipeline_mode = #tpu.pipeline_mode<synchronous>, transform_indices = @transform_3, window_bounds = array<i64: 64, 1>}, {pipeline_mode = #tpu.pipeline_mode<synchronous>, transform_indices = @transform_4, window_bounds = array<i64: 64, 1>}, {transform_indices = @transform_5, window_bounds = array<i64: 1, 1>}, {transform_indices = @transform_6, window_bounds = array<i64: 1, 128>}]} {
    %c0 = arith.constant 0 : index
    %c0_0 = arith.constant 0 : index
    %0 = vector.load %arg2[%c0, %c0_0] : memref<64x1xf32, #tpu.memory_space<vmem>>, vector<64x1xf32>
    %c0_1 = arith.constant 0 : index
    %c0_2 = arith.constant 0 : index
    %1 = vector.load %arg3[%c0_1, %c0_2] : memref<64x1xf32, #tpu.memory_space<vmem>>, vector<64x1xf32>
    %c0_3 = arith.constant 0 : index
    %c0_4 = arith.constant 0 : index
    %2 = vector.load %arg4[%c0_3, %c0_4] : memref<64x1xf32, #tpu.memory_space<vmem>>, vector<64x1xf32>
    %c0_5 = arith.constant 0 : index
    %c0_6 = arith.constant 0 : index
    %3 = vector.load %arg5[%c0_5, %c0_6] : memref<64x1xf32, #tpu.memory_space<vmem>>, vector<64x1xf32>
    %c0_7 = arith.constant 0 : index
    %c0_8 = arith.constant 0 : index
    %4 = memref.load %arg6[%c0_7, %c0_8] : memref<1x1xf32, #tpu.memory_space<smem>>
    %c0_i32 = arith.constant 0 : i32
    %c128_i32 = arith.constant 128 : i32
    %5 = arith.muli %c0_i32, %c128_i32 : i32
    %6 = tpu.assume_multiple %5, 128 : i32
    %c0_9 = arith.constant 0 : index
    %7 = arith.index_cast %6 : i32 to index
    %8 = vector.load %arg1[%c0_9, %7] : memref<2x128xf32, #tpu.memory_space<vmem>>, vector<2x128xf32>
    %9 = vector.extract_strided_slice %8 {offsets = [0, 0], sizes = [1, 128], strides = [1, 1]} : vector<2x128xf32> to vector<1x128xf32>
    %10 = vector.broadcast %0 : vector<64x1xf32> to vector<64x128xf32>
    %11 = vector.broadcast %9 : vector<1x128xf32> to vector<64x128xf32>
    %12 = arith.mulf %10, %11 : vector<64x128xf32>
    %13 = vector.extract_strided_slice %8 {offsets = [1, 0], sizes = [1, 128], strides = [1, 1]} : vector<2x128xf32> to vector<1x128xf32>
    %14 = vector.broadcast %1 : vector<64x1xf32> to vector<64x128xf32>
    %15 = vector.broadcast %13 : vector<1x128xf32> to vector<64x128xf32>
    %16 = arith.mulf %14, %15 : vector<64x128xf32>
    %17 = arith.addf %12, %16 : vector<64x128xf32>
    %18 = vector.broadcast %2 : vector<64x1xf32> to vector<64x128xf32>
    %19 = arith.addf %17, %18 : vector<64x128xf32>
    %cst = arith.constant 0.000000e+00 : f32
    %20 = vector.broadcast %cst : f32 to vector<64x128xf32>
    %21 = arith.maximumf %19, %20 : vector<64x128xf32>
    %22 = vector.broadcast %3 : vector<64x1xf32> to vector<64x128xf32>
    %23 = arith.mulf %22, %21 : vector<64x128xf32>
    %cst_10 = arith.constant dense<0.000000e+00> : vector<128xf32>
    %24 = vector.multi_reduction <add>, %23, %cst_10 [0] : vector<64x128xf32> to vector<128xf32>
    %25 = vector.shape_cast %24 : vector<128xf32> to vector<1x128xf32>
    %26 = vector.broadcast %4 : f32 to vector<1x128xf32>
    %27 = arith.addf %25, %26 : vector<1x128xf32>
    %c0_11 = arith.constant 0 : index
    %28 = arith.index_cast %6 : i32 to index
    %29 = vector.load %arg7[%c0_11, %28] : memref<1x128xf32, #tpu.memory_space<vmem>>, vector<1x128xf32>
    tpu.vector_store %arg7[%c0_11, %28], %27 {strides = array<i32>} : memref<1x128xf32, #tpu.memory_space<vmem>>, vector<1x128xf32>,
    %c1_i32 = arith.constant 1 : i32
    return
  }
  func.func @transform_0(%arg0: i32) -> (i32, i32) {
    %c0_i32 = arith.constant 0 : i32
    %c0_i32_0 = arith.constant 0 : i32
    return %c0_i32, %arg0 : i32, i32
  }
  func.func @transform_1(%arg0: i32) -> (i32, i32) {
    %c0_i32 = arith.constant 0 : i32
    %c0_i32_0 = arith.constant 0 : i32
    %c0_i32_1 = arith.constant 0 : i32
    return %c0_i32, %c0_i32_0 : i32, i32
  }
  func.func @transform_2(%arg0: i32) -> (i32, i32) {
    %c0_i32 = arith.constant 0 : i32
    %c0_i32_0 = arith.constant 0 : i32
    %c0_i32_1 = arith.constant 0 : i32
    return %c0_i32, %c0_i32_0 : i32, i32
  }
  func.func @transform_3(%arg0: i32) -> (i32, i32) {
    %c0_i32 = arith.constant 0 : i32
    %c0_i32_0 = arith.constant 0 : i32
    %c0_i32_1 = arith.constant 0 : i32
    return %c0_i32, %c0_i32_0 : i32, i32
  }
  func.func @transform_4(%arg0: i32) -> (i32, i32) {
    %c0_i32 = arith.constant 0 : i32
    %c0_i32_0 = arith.constant 0 : i32
    %c0_i32_1 = arith.constant 0 : i32
    return %c0_i32, %c0_i32_0 : i32, i32
  }
  func.func @transform_5(%arg0: i32) -> (i32, i32) {
    %c0_i32 = arith.constant 0 : i32
    %c0_i32_0 = arith.constant 0 : i32
    %c0_i32_1 = arith.constant 0 : i32
    return %c0_i32, %c0_i32_0 : i32, i32
  }
  func.func @transform_6(%arg0: i32) -> (i32, i32) {
    %c0_i32 = arith.constant 0 : i32
    %c0_i32_0 = arith.constant 0 : i32
    return %c0_i32, %arg0 : i32, i32
  }
}

</mosaic_0001>

<bundles_post_ra>
// kernel: tpu_custom_call.1
= control target key start
LH: loop header
LB: loop body
LE: loop exit
PB: predicated region body
PF: predicated region fallthrough
CT: control target
= control target key end

     0   :  { %v333_v2 = vmov 0   ;;  %s484_s0 = inlined_call_operand.vmem [shape: f32[2,128], index: 0, kind: input, shape index: {}]   ;;  %s485_s1 = inlined_call_operand.vmem [shape: f32[64,1], index: 1, kind: input, shape index: {}]   ;;  %s486_s2 = inlined_call_operand.vmem [shape: f32[64,1], index: 2, kind: input, shape index: {}]   ;;  %s487_s3 = inlined_call_operand.vmem [shape: f32[64,1], index: 3, kind: input, shape index: {}]   ;;  %s488_s4 = inlined_call_operand.vmem [shape: f32[64,1], index: 4, kind: input, shape index: {}]   ;;  %s489_s5 = inlined_call_operand.<no memory space> [shape: f32[1,1], index: 5, kind: input, shape index: {}]   ;;  %s490_s6 = inlined_call_operand.hbm [shape: f32[1,128], index: 6, kind: output, shape index: {}]  }
   0x1   :  { %v27_v0 = vld [vmem:[%s485_s1 + $0x10] sm:$0xff]  ;;  %v25_v1 = vld [vmem:[%s485_s1] sm:$0xff]  ;;  %308 = vset.pattern.permute.xlu1 %v333_v2  ;;  %307 = vset.pattern.permute.xlu0 %v333_v2  ;;  %v28_v3 = vld [vmem:[%s485_s1 + $0x18] sm:$0xff] }
   0x2   :  { %71 = vperm.xlu1 %308, %v27_v0   ;;  %61 = vperm.xlu0 %307, %v25_v1   ;;  %v26_v4 = vld [vmem:[%s485_s1 + $0x8] sm:$0xff]  ;;  %v29_v6 = vld [vmem:[%s485_s1 + $0x20] sm:$0xff] }
   0x3   :  { %v30_v5 = vld [vmem:[%s485_s1 + $0x28] sm:$0xff]  ;;  %v33_v8 = vld [vmem:[%s486_s2] sm:$0xff] }
   0x4   :  { %v34_v7 = vld [vmem:[%s486_s2 + $0x8] sm:$0xff] }
   0x6   :  { %76 = vperm.xlu1 %308, %v28_v3   ;;  %66 = vperm.xlu0 %307, %v26_v4  }
   0xa   :  { %86 = vperm.xlu1 %308, %v30_v5   ;;  %81 = vperm.xlu0 %307, %v29_v6  }
   0xb   :  { %12 = vsyncpa [#allocation4], 0  ;;  %v36_v9 = vld [vmem:[%s486_s2 + $0x18] sm:$0xff]  ;;  %v35_v10 = vld [vmem:[%s486_s2 + $0x10] sm:$0xff]  ;;  %v99_v45 = vlaneseq  ;;  %s334_s12 = smov [#allocation3]  }
   0xc   :  { %v42_v11 = vld [vmem:[%s487_s3 + $0x8] sm:$0xff]  ;;  %v41_v12 = vld [vmem:[%s487_s3] sm:$0xff]  ;;  %v43_v13 = vld [vmem:[%s487_s3 + $0x10] sm:$0xff]  ;;  %s297_s13 = sshll.u32 %s334_s12, 4  ;;  %s298_s13 = int_to_ptr.vmem [resolvable:$true] %s297_s13 }
   0xd   :  { %v37_v14 = vld [vmem:[%s486_s2 + $0x20] sm:$0xff]  ;;  %v44_v15 = vld [vmem:[%s487_s3 + $0x18] sm:$0xff]  ;;  %v38_v16 = vld [vmem:[%s486_s2 + $0x28] sm:$0xff]  ;;  %v100_v48 = vshrl.u32 %v99_v45, 7  ;;  %s309_s14 = scalar_lea.vmem %s298_s13, 16  ;;  %s313_s15 = scalar_lea.vmem %s298_s13, 32 }
   0xe   :  { %118 = vperm.xlu1 %308, %v34_v7   ;;  %113 = vperm.xlu0 %307, %v33_v8   ;;  %v50_v17 = vld [vmem:[%s488_s4 + $0x8] sm:$0xff]  ;;  %v49_v18 = vld [vmem:[%s488_s4] sm:$0xff]  ;;  %v39_v19 = vld [vmem:[%s486_s2 + $0x30] sm:$0xff]  ;;  %p310_p0 = scmp.ne.s32.totalorder %s298_s13, %s309_s14  ;;  %p314_p1 = scmp.lt.s32.totalorder %s298_s13, %s298_s13 }
   0xf   :  { %v31_v20 = vld [vmem:[%s485_s1 + $0x30] sm:$0xff]  ;;  %v45_v22 = vld [vmem:[%s487_s3 + $0x20] sm:$0xff]  ;;  %v40_v23 = vld [vmem:[%s486_s2 + $0x38] sm:$0xff]  ;;  %v153_v49 = vsub.s32 1, %v100_v48  ;;  %v101_v52 = vsub.s32 0, %v100_v48  ;;  %p315_p2 = scmp.lt.s32.totalorder %s313_s15, %s309_s14 }
  0x10   :  { %v51_v21 = vld [vmem:[%s488_s4 + $0x10] sm:$0xff]  ;;  %v32_v24 = vld [vmem:[%s485_s1 + $0x38] sm:$0xff]  ;;  %v46_v26 = vld [vmem:[%s487_s3 + $0x28] sm:$0xff] }
  0x11   :  { %v52_v25 = vld [vmem:[%s488_s4 + $0x18] sm:$0xff]  ;;  %v53_v27 = vld [vmem:[%s488_s4 + $0x20] sm:$0xff]  ;;  %v47_v28 = vld [vmem:[%s487_s3 + $0x30] sm:$0xff]  ;;  %p316_p3 = por %p315_p2, %p314_p1 }
  0x12   :  { %128 = vperm.xlu1 %308, %v36_v9   ;;  %123 = vperm.xlu0 %307, %v35_v10   ;;  %v54_v29 = vld [vmem:[%s488_s4 + $0x28] sm:$0xff]  ;;  %v48_v30 = vld [vmem:[%s487_s3 + $0x38] sm:$0xff]  ;;  %v55_v32 = vld [vmem:[%s488_s4 + $0x30] sm:$0xff] }
  0x13   :  { %v56_v31 = vld [vmem:[%s488_s4 + $0x38] sm:$0xff]  ;;  %v58_v53 = vld [vmem:[%s484_s0] sm:$0x3]  ;;  %p317_p4 = pnand %p316_p3, %p310_p0 }
  0x14   :  { %v154_v54 = vrot.slane %v58_v53, %v153_v49  ;;  %v102_v57 = vrot.slane %v58_v53, %v101_v52 }
  0x16   :  { %178 = vperm.xlu1 %308, %v42_v11   ;;  %173 = vperm.xlu0 %307, %v41_v12  }
  0x1a   :  { %183 = vperm.xlu1 %308, %v43_v13   ;;  %133 = vperm.xlu0 %307, %v37_v14  }
  0x1e   :  { %188 = vperm.xlu1 %308, %v44_v15   ;;  %138 = vperm.xlu0 %307, %v38_v16  }
  0x22   :  { %234 = vperm.xlu1 %308, %v50_v17   ;;  %229 = vperm.xlu0 %307, %v49_v18  }
  0x26   :  { %143 = vperm.xlu1 %308, %v39_v19   ;;  %91 = vperm.xlu0 %307, %v31_v20  }
  0x2a   :  { %239 = vperm.xlu1 %308, %v51_v21   ;;  %193 = vperm.xlu0 %307, %v45_v22  }
  0x2e   :  { %148 = vperm.xlu1 %308, %v40_v23   ;;  %96 = vperm.xlu0 %307, %v32_v24  }
  0x32   :  { %244 = vperm.xlu1 %308, %v52_v25   ;;  %198 = vperm.xlu0 %307, %v46_v26  }
  0x36   :  { %249 = vperm.xlu1 %308, %v53_v27   ;;  %203 = vperm.xlu0 %307, %v47_v28  }
  0x3a   :  { %254 = vperm.xlu1 %308, %v54_v29   ;;  %208 = vperm.xlu0 %307, %v48_v30  }
  0x3e   :  { %264 = vperm.xlu1 %308, %v56_v31   ;;  %259 = vperm.xlu0 %307, %v55_v32  }
  0x81   :  { %v72_v33 = vpop.permute.xlu1 %71  ;;  %v62_v34 = vpop.permute.xlu0 %61 }
  0x82   :  { %v103_v62 = vmul.f32 %v102_v57, %v62_v34  ;;  %v105_v1 = vmul.f32 %v102_v57, %v72_v33 }
  0x85   :  { %v77_v35 = vpop.permute.xlu1 %76  ;;  %v67_v36 = vpop.permute.xlu0 %66 }
  0x86   :  { %v104_v63 = vmul.f32 %v102_v57, %v67_v36  ;;  %v106_v10 = vmul.f32 %v102_v57, %v77_v35 }
  0x89   :  { %v87_v37 = vpop.permute.xlu1 %86  ;;  %v82_v38 = vpop.permute.xlu0 %81 }
  0x8a   :  { %v107_v15 = vmul.f32 %v102_v57, %v82_v38  ;;  %v108_v20 = vmul.f32 %v102_v57, %v87_v37 }
  0x8d   :  { %v119_v39 = vpop.permute.xlu1 %118  ;;  %v114_v40 = vpop.permute.xlu0 %113 }
  0x8e   :  { %v156_v58 = vmul.f32 %v154_v54, %v119_v39  ;;  %v155_v59 = vmul.f32 %v154_v54, %v114_v40 }
  0x90   :  { %v164_v2 = vadd.f32 %v156_v58, %v104_v63  ;;  %v163_v3 = vadd.f32 %v155_v59, %v103_v62 }
  0x91   :  { %v129_v41 = vpop.permute.xlu1 %128  ;;  %v124_v42 = vpop.permute.xlu0 %123 }
  0x92   :  { %v157_v0 = vmul.f32 %v154_v54, %v124_v42  ;;  %v158_v6 = vmul.f32 %v154_v54, %v129_v41 }
  0x94   :  { %v165_v9 = vadd.f32 %v157_v0, %v105_v1  ;;  %v166_v16 = vadd.f32 %v158_v6, %v106_v10 }
  0x95   :  { %v179_v43 = vpop.permute.xlu1 %178  ;;  %v174_v44 = vpop.permute.xlu0 %173 }
  0x96   :  { %v212_v7 = vadd.f32 %v179_v43, %v164_v2  ;;  %v211_v8 = vadd.f32 %v174_v44, %v163_v3 }
  0x98   :  { %v220_v18 = vmax.f32 %v212_v7, 0.0  ;;  %v219_v19 = vmax.f32 %v211_v8, 0.0 }
  0x99   :  { %v184_v46 = vpop.permute.xlu1 %183  ;;  %v134_v47 = vpop.permute.xlu0 %133 }
  0x9a   :  { %v159_v11 = vmul.f32 %v154_v54, %v134_v47  ;;  %v213_v12 = vadd.f32 %v184_v46, %v165_v9 }
  0x9c   :  { %v167_v22 = vadd.f32 %v159_v11, %v107_v15  ;;  %v221_v23 = vmax.f32 %v213_v12, 0.0 }
  0x9d   :  { %v189_v50 = vpop.permute.xlu1 %188  ;;  %v139_v51 = vpop.permute.xlu0 %138 }
  0x9e   :  { %v160_v17 = vmul.f32 %v154_v54, %v139_v51  ;;  %v214_v21 = vadd.f32 %v189_v50, %v166_v16 }
  0xa0   :  { %v168_v31 = vadd.f32 %v160_v17, %v108_v20  ;;  %v222_v33 = vmax.f32 %v214_v21, 0.0 }
  0xa1   :  { %v235_v55 = vpop.permute.xlu1 %234  ;;  %v230_v56 = vpop.permute.xlu0 %229 }
  0xa2   :  { %v268_v24 = vmul.f32 %v235_v55, %v220_v18  ;;  %v267_v25 = vmul.f32 %v230_v56, %v219_v19 }
  0xa4   :  { %v275_v38 = vadd.f32 %v268_v24, %v267_v25 }
  0xa5   :  { %v144_v60 = vpop.permute.xlu1 %143  ;;  %v92_v61 = vpop.permute.xlu0 %91 }
  0xa6   :  { %v161_v28 = vmul.f32 %v154_v54, %v144_v60  ;;  %v109_v29 = vmul.f32 %v102_v57, %v92_v61 }
  0xa8   :  { %v169_v42 = vadd.f32 %v161_v28, %v109_v29 }
  0xa9   :  { %v240_v4 = vpop.permute.xlu1 %239  ;;  %v194_v5 = vpop.permute.xlu0 %193 }
  0xaa   :  { %v215_v30 = vadd.f32 %v194_v5, %v167_v22  ;;  %v269_v32 = vmul.f32 %v240_v4, %v221_v23  ;;  %v288_v4 = vstv %s489_s5 }
  0xac   :  { %v223_v37 = vmax.f32 %v215_v30, 0.0  ;;  %v276_v43 = vadd.f32 %v275_v38, %v269_v32 }
  0xad   :  { %v149_v13 = vpop.permute.xlu1 %148  ;;  %v97_v14 = vpop.permute.xlu0 %96 }
  0xae   :  { %v162_v34 = vmul.f32 %v154_v54, %v149_v13  ;;  %v110_v35 = vmul.f32 %v102_v57, %v97_v14 }
  0xb0   :  { %v170_v47 = vadd.f32 %v162_v34, %v110_v35 }
  0xb1   :  { %v245_v26 = vpop.permute.xlu1 %244  ;;  %v199_v27 = vpop.permute.xlu0 %198 }
  0xb2   :  { %v216_v36 = vadd.f32 %v199_v27, %v168_v31  ;;  %v270_v41 = vmul.f32 %v245_v26, %v222_v33 }
  0xb4   :  { %v224_v44 = vmax.f32 %v216_v36, 0.0  ;;  %v277_v50 = vadd.f32 %v276_v43, %v270_v41 }
  0xb5   :  { %v250_v39 = vpop.permute.xlu1 %249  ;;  %v204_v40 = vpop.permute.xlu0 %203 }
  0xb6   :  { %v271_v45 = vmul.f32 %v250_v39, %v223_v37  ;;  %v217_v46 = vadd.f32 %v204_v40, %v169_v42 }
  0xb8   :  { %v278_v53 = vadd.f32 %v277_v50, %v271_v45  ;;  %v225_v54 = vmax.f32 %v217_v46, 0.0 }
  0xb9   :  { %v255_v48 = vpop.permute.xlu1 %254  ;;  %v209_v49 = vpop.permute.xlu0 %208 }
  0xba   :  { %v272_v51 = vmul.f32 %v255_v48, %v224_v44  ;;  %v218_v52 = vadd.f32 %v209_v49, %v170_v47 }
  0xbc   :  { %v226_v55 = vmax.f32 %v218_v52, 0.0  ;;  %v279_v58 = vadd.f32 %v278_v53, %v272_v51 }
  0xbd   :  { %v265_v56 = vpop.permute.xlu1 %264  ;;  %v260_v57 = vpop.permute.xlu0 %259 }
  0xbe   :  { %v273_v59 = vmul.f32 %v260_v57, %v225_v54  ;;  %v274_v60 = vmul.f32 %v265_v56, %v226_v55 }
  0xc0   :  { %v280_v61 = vadd.f32 %v279_v58, %v273_v59 }
  0xc2   :  { %v281_v62 = vadd.f32 %v280_v61, %v274_v60 }
  0xc4   :  { %v282_v63 = vrot.slane %v281_v62, 4 }
  0xc6   :  { %v283_v0 = vadd.f32 %v282_v63, %v281_v62 }
  0xc8   :  { %v284_v1 = vrot.slane %v283_v0, 2 }
  0xca   :  { %v285_v2 = vadd.f32 %v284_v1, %v283_v0 }
  0xcc   :  { %v286_v3 = vrot.slane %v285_v2, 1 }
  0xce   :  { %v287_v5 = vadd.f32 %v286_v3, %v285_v2 }
  0xd0   :  { %v289_v6 = vadd.f32 %v288_v4, %v287_v5 }
  0xd2   :  { %290 = vst [vmem:[#allocation3] sm:$0x1] %v289_v6 }
  0xd3   :  { %320 = shalt.err (!%p317_p4)
}
  0xd4   :  { %s321_s18 = scalar_lea.hbm %s490_s6, 16 }
  0xd5   :  { %p322_p5 = scmp.ne.s32.totalorder %s490_s6, %s321_s18  ;;  %p325_p6 = scmp.lt.u32.totalorder %s321_s18, %s490_s6 }
  0xd7   :  { %p327_p7 = pnand %p325_p6, %p322_p5 }
  0xd9   :  { %330 = shalt.err (!%p327_p7)
}
  0xda   :  { %300 = dma.vmem_to_hbm [thread:$0]  %s298_s13, 16, %s490_s6, [#allocation4]  }
  0xdb   :  { %331 = dma.done.wait [#allocation4], 16  }
  0xdc   :  { %332 = vsyncadd [#allocation4], 4294967280 }
  0xdd   :  { %304 = vsyncpa [#allocation4], 1 }

</bundles_post_ra>
